<compile_context>
chip_gen: v7x
topology: tpu7x:2x2x1
jax: 0.10.0
libtpu: 0.0.40
codegen_flags: <defaults>
</compile_context>

<pallas_src>
import functools

import jax
import jax.numpy as jnp
from jax.experimental import pallas as pl
from jax.experimental.pallas import tpu as pltpu


# VMEM budgets, chosen to be safe on every generation (v7x: 64 MiB physical / 32 MiB scoped default;
# v5e/v6e: 128 MiB physical / 16 and 32 MiB scoped defaults).
_VMEM_LIMIT_BYTES = 48 * 1024 * 1024   # raised scoped VMEM limit; actual use stays <= ~32 MiB
_RESIDENT_BYTES = 8 * 1024 * 1024      # per-plane block budget for the single-read fused path
_TILE_BYTES = 4 * 1024 * 1024          # per-block byte target for the streaming two-pass path


def _compiler_params(dimension_semantics):
    return pltpu.CompilerParams(dimension_semantics=dimension_semantics,
                                vmem_limit_bytes=_VMEM_LIMIT_BYTES)


def _round_up(x, m):
    return (x + m - 1) // m * m


def _stream_tile_lanedense(m, c):
    """Lane tile (multiple of 128) targeting ~_TILE_BYTES for a (C, TM) f32 block."""
    lanes = max(128, (_TILE_BYTES // (4 * c)) // 128 * 128)
    return int(min(lanes, _round_up(m, 128)))


def _stream_tile_native(l, c):
    """Largest divisor of L that is a multiple of 128 and fits ~_TILE_BYTES for a (C, TL) block."""
    n128 = l // 128
    best = 1
    for d in range(1, n128 + 1):
        if n128 % d == 0 and d * 128 * 4 * c <= _TILE_BYTES:
            best = d
    return best * 128


# ----------------------------------------------------------------------------------------------
# Kernels
# ----------------------------------------------------------------------------------------------

def _fused_kernel(x_ref, g_ref, b_ref, o_ref, *, eps, inv_count, channel_axis):
    """Single-read path: stats + normalize on a whole VMEM-resident plane (read once, write once)."""
    x = x_ref[...]
    s = x
    ssq = x * x
    for axis in sorted((a for a in range(x.ndim) if a != channel_axis), reverse=True):
        s = jnp.sum(s, axis=axis, keepdims=True)
        ssq = jnp.sum(ssq, axis=axis, keepdims=True)
    mean = s * inv_count
    var = jnp.maximum(ssq * inv_count - mean * mean, 0.0)   # clamp f32 cancellation before rsqrt
    scale = g_ref[...] * jax.lax.rsqrt(var + eps)           # g_ref/b_ref are (C, 1)
    shift = b_ref[...] - mean * scale
    o_ref[...] = x * scale + shift


def _stats_kernel(x_ref, g_ref, b_ref, scale_ref, shift_ref, sum_acc, ssq_acc, *, eps, inv_count):
    """Streaming pass 1: per-channel sum / sum-of-squares over (C, T) tiles -> folded scale/shift."""
    t = pl.program_id(1)

    @pl.when(t == 0)
    def _():
        sum_acc[...] = jnp.zeros_like(sum_acc)
        ssq_acc[...] = jnp.zeros_like(ssq_acc)

    x = x_ref[...]                                            # (C, T) float32
    sum_acc[...] += jnp.sum(x, axis=1, keepdims=True)         # (C, 1)
    ssq_acc[...] += jnp.sum(x * x, axis=1, keepdims=True)     # (C, 1)

    @pl.when(t == pl.num_programs(1) - 1)
    def _():
        mean = sum_acc[...] * inv_count
        var = jnp.maximum(ssq_acc[...] * inv_count - mean * mean, 0.0)
        scale = g_ref[...] * jax.lax.rsqrt(var + eps)
        scale_ref[...] = scale
        shift_ref[...] = b_ref[...] - mean * scale


def _normalize_kernel(x_ref, scale_ref, shift_ref, o_ref):
    """Streaming pass 2: y = x * scale + shift (one mul + one add per element, lane-dense stores)."""
    o_ref[...] = x_ref[...] * scale_ref[...] + shift_ref[...]


# ----------------------------------------------------------------------------------------------
# Per-layout drivers
# ----------------------------------------------------------------------------------------------

def _bn_planes_native(planes, gamma, beta, eps, inv_count, force_streaming):
    """planes: (2, N, C, L) float32 in native layout (no transposes), L % 128 == 0."""
    _, n, c, l = planes.shape
    param_spec1 = pl.BlockSpec((None, c, 1), lambda p: (p, 0, 0))

    if (not force_streaming) and n * c * l * 4 <= _RESIDENT_BYTES:
        # VMEM-resident fused path: read once, write once.
        x_spec = pl.BlockSpec((None, n, c, l), lambda p: (p, 0, 0, 0))
        return pl.pallas_call(
            functools.partial(_fused_kernel, eps=eps, inv_count=inv_count, channel_axis=1),
            out_shape=jax.ShapeDtypeStruct(planes.shape, jnp.float32),
            grid=(2,),
            in_specs=[x_spec, param_spec1, param_spec1],
            out_specs=x_spec,
            compiler_params=_compiler_params(("parallel",)),
        )(planes, gamma, beta)

    # Streaming two-pass path over (plane, N x L-tile) grid; kernel always sees (C, TL) blocks.
    tl = _stream_tile_native(l, c)
    n_l = l // tl
    n_tiles = n * n_l
    x_spec = pl.BlockSpec((None, None, c, tl), lambda p, t: (p, t // n_l, 0, t % n_l))
    param_spec = pl.BlockSpec((None, c, 1), lambda p, t: (p, 0, 0))

    scale, shift = pl.pallas_call(
        functools.partial(_stats_kernel, eps=eps, inv_count=inv_count),
        out_shape=(jax.ShapeDtypeStruct((2, c, 1), jnp.float32),
                   jax.ShapeDtypeStruct((2, c, 1), jnp.float32)),
        grid=(2, n_tiles),
        in_specs=[x_spec, param_spec, param_spec],
        out_specs=(param_spec, param_spec),
        scratch_shapes=[pltpu.VMEM((c, 1), jnp.float32),
                        pltpu.VMEM((c, 1), jnp.float32)],
        compiler_params=_compiler_params(("parallel", "arbitrary")),
    )(planes, gamma, beta)

    return pl.pallas_call(
        _normalize_kernel,
        out_shape=jax.ShapeDtypeStruct(planes.shape, jnp.float32),
        grid=(2, n_tiles),
        in_specs=[x_spec, param_spec, param_spec],
        out_specs=x_spec,
        compiler_params=_compiler_params(("parallel", "parallel")),
    )(planes, scale, shift)


def _bn_planes_lanedense(planes, gamma, beta, eps, inv_count, force_streaming):
    """planes: (2, C, M) float32 lane-dense fallback layout (per-channel rows contiguous)."""
    _, c, m = planes.shape

    resident = (not force_streaming) and c * _round_up(m, 128) * 4 <= _RESIDENT_BYTES
    if resident:
        mp = _round_up(m, 128)
        tm = mp
        n_tiles = 1
    else:
        tm = _stream_tile_lanedense(m, c)
        mp = _round_up(m, tm)
        n_tiles = mp // tm

    # Zero-padding is exact for sum / sum-of-squares (inv_count uses the true element count).
    xp = planes if mp == m else jnp.pad(planes, ((0, 0), (0, 0), (0, mp - m)))

    if resident:
        x_spec = pl.BlockSpec((None, c, mp), lambda p: (p, 0, 0))
        param_spec = pl.BlockSpec((None, c, 1), lambda p: (p, 0, 0))
        out = pl.pallas_call(
            functools.partial(_fused_kernel, eps=eps, inv_count=inv_count, channel_axis=0),
            out_shape=jax.ShapeDtypeStruct((2, c, mp), jnp.float32),
            grid=(2,),
            in_specs=[x_spec, param_spec, param_spec],
            out_specs=x_spec,
            compiler_params=_compiler_params(("parallel",)),
        )(xp, gamma, beta)
    else:
        x_spec = pl.BlockSpec((None, c, tm), lambda p, t: (p, 0, t))
        param_spec = pl.BlockSpec((None, c, 1), lambda p, t: (p, 0, 0))
        scale, shift = pl.pallas_call(
            functools.partial(_stats_kernel, eps=eps, inv_count=inv_count),
            out_shape=(jax.ShapeDtypeStruct((2, c, 1), jnp.float32),
                       jax.ShapeDtypeStruct((2, c, 1), jnp.float32)),
            grid=(2, n_tiles),
            in_specs=[x_spec, param_spec, param_spec],
            out_specs=(param_spec, param_spec),
            scratch_shapes=[pltpu.VMEM((c, 1), jnp.float32),
                            pltpu.VMEM((c, 1), jnp.float32)],
            compiler_params=_compiler_params(("parallel", "arbitrary")),
        )(xp, gamma, beta)
        out = pl.pallas_call(
            _normalize_kernel,
            out_shape=jax.ShapeDtypeStruct((2, c, mp), jnp.float32),
            grid=(2, n_tiles),
            in_specs=[x_spec, param_spec, param_spec],
            out_specs=x_spec,
            compiler_params=_compiler_params(("parallel", "parallel")),
        )(xp, scale, shift)

    return out if mp == m else out[:, :, :m]


# ----------------------------------------------------------------------------------------------
# Public wrapper
# ----------------------------------------------------------------------------------------------

@functools.partial(jax.jit, static_argnames=("eps", "force_streaming"))
def naive_complex_batchnorm1d(x_complex, gamma_r, beta_r, gamma_i, beta_i, eps=1e-5,
                              *, force_streaming=False):
    """Forward pass of NaiveComplexBatchNorm1d (training mode, affine=True).

    x_complex: complex64 (N, C, L);  gamma_*/beta_*: float32 (C,).  Returns complex64 (N, C, L).
    """
    n, c, l = x_complex.shape
    m = n * l
    eps = float(eps)
    inv_count = 1.0 / float(m)

    xr = jnp.real(x_complex).astype(jnp.float32)
    xi = jnp.imag(x_complex).astype(jnp.float32)
    gamma = jnp.stack([gamma_r, gamma_i], axis=0).astype(jnp.float32).reshape(2, c, 1)
    beta = jnp.stack([beta_r, beta_i], axis=0).astype(jnp.float32).reshape(2, c, 1)

    if l % 128 == 0:
        # Native layout path: no HBM transpose copies; C on sublanes, L on lanes.
        planes = jnp.stack([xr, xi], axis=0)                                  # (2, N, C, L)
        out = _bn_planes_native(planes, gamma, beta, eps, inv_count, force_streaming)
        out_r, out_i = out[0], out[1]
    else:
        # Lane-dense fallback for lane-unfriendly L: (2, C, N*L), zero-padded to 128-lane multiples.
        planes = jnp.transpose(jnp.stack([xr, xi], axis=0), (0, 2, 1, 3)).reshape(2, c, m)
        out = _bn_planes_lanedense(planes, gamma, beta, eps, inv_count, force_streaming)
        out = out.reshape(2, c, n, l)
        out_r = jnp.transpose(out[0], (1, 0, 2))
        out_i = jnp.transpose(out[1], (1, 0, 2))

    return jax.lax.complex(out_r, out_i)   # complex64, no complex128 round trip


# ----------------------------------------------------------------------------------------------
# Reference + self-test
# ----------------------------------------------------------------------------------------------

def _reference(x_complex, gamma_r, beta_r, gamma_i, beta_i, eps=1e-5):
    def bn(v, g, b):
        mean = jnp.mean(v, axis=(0, 2), keepdims=True)
        var = jnp.mean((v - mean) ** 2, axis=(0, 2), keepdims=True)
        return (v - mean) / jnp.sqrt(var + eps) * g.reshape(1, -1, 1) + b.reshape(1, -1, 1)

    xr = jnp.real(x_complex).astype(jnp.float32)
    xi = jnp.imag(x_complex).astype(jnp.float32)
    return jax.lax.complex(bn(xr, gamma_r, beta_r), bn(xi, gamma_i, beta_i))


def _make_case(key, n, c, l):
    ks = jax.random.split(key, 6)
    xr = jax.random.normal(ks[0], (n, c, l), dtype=jnp.float32)
    xi = jax.random.normal(ks[1], (n, c, l), dtype=jnp.float32)
    x = jax.lax.complex(xr, xi)  # complex64
    # PyTorch default init is weight=1, bias=0; perturb deterministically to exercise the affine path.
    gr = 1.0 + 0.1 * jax.random.normal(ks[2], (c,), dtype=jnp.float32)
    br = 0.1 * jax.random.normal(ks[3], (c,), dtype=jnp.float32)
    gi = 1.0 + 0.1 * jax.random.normal(ks[4], (c,), dtype=jnp.float32)
    bi = 0.1 * jax.random.normal(ks[5], (c,), dtype=jnp.float32)
    return x, gr, br, gi, bi


if __name__ == "__main__":
    key = jax.random.PRNGKey(0)
    k_main, k_extra = jax.random.split(key)

    # Primary case: BatchNorm1d's (batch, num_features, length) convention at a small shape.
    x, gr, br, gi, bi = _make_case(k_main, 2, 4, 16)
    out = jax.block_until_ready(naive_complex_batchnorm1d(x, gr, br, gi, bi))
    ref = _reference(x, gr, br, gi, bi)
    assert out.shape == x.shape and out.dtype == jnp.complex64
    err = float(jnp.max(jnp.abs(out - ref)))
    assert err < 2e-4, err

    # Exercise the remaining code paths (native lane-friendly layout; streaming two-pass pipelines).
    extra_cases = [
        ((2, 4, 128), False),   # native layout, VMEM-resident fused path
        ((2, 4, 256), True),    # native layout, streaming two-pass path
        ((2, 4, 16), True),     # lane-dense fallback, streaming two-pass path
    ]
    for idx, (shape, force_stream) in enumerate(extra_cases):
        xc, cgr, cbr, cgi, cbi = _make_case(jax.random.fold_in(k_extra, idx), *shape)
        o = jax.block_until_ready(
            naive_complex_batchnorm1d(xc, cgr, cbr, cgi, cbi, force_streaming=force_stream))
        r = _reference(xc, cgr, cbr, cgi, cbi)
        e = float(jnp.max(jnp.abs(o - r)))
        assert e < 2e-4, (shape, force_stream, e)

    print("KERNEL_OK")
</pallas_src>

<mosaic_0001>
module attributes {stable_mosaic.version = 11 : i64} {
  func.func @_fused_kernel(%arg0: i32, %arg1: memref<1x4x128xf32, #tpu.memory_space<vmem>>, %arg2: memref<1x4x1xf32, #tpu.memory_space<vmem>>, %arg3: memref<1x4x1xf32, #tpu.memory_space<vmem>>, %arg4: memref<1x4x128xf32, #tpu.memory_space<vmem>>) attributes {dimension_semantics = [#tpu.dimension_semantics<parallel>], iteration_bounds = array<i64: 2>, scalar_prefetch = 0 : i64, scratch_operands = 0 : i64, tpu.core_type = #tpu.core_type<tc>, window_params = [{transform_indices = @transform_0, window_bounds = array<i64: 1, 4, 128>}, {transform_indices = @transform_1, window_bounds = array<i64: 1, 4, 1>}, {transform_indices = @transform_2, window_bounds = array<i64: 1, 4, 1>}, {transform_indices = @transform_3, window_bounds = array<i64: 1, 4, 128>}]} {
    %c0 = arith.constant 0 : index
    %c0_0 = arith.constant 0 : index
    %c0_1 = arith.constant 0 : index
    %0 = vector.load %arg1[%c0, %c0_0, %c0_1] : memref<1x4x128xf32, #tpu.memory_space<vmem>>, vector<1x4x128xf32>
    %1 = vector.shape_cast %0 : vector<1x4x128xf32> to vector<4x128xf32>
    %2 = arith.mulf %1, %1 : vector<4x128xf32>
    %cst = arith.constant dense<0.000000e+00> : vector<4xf32>
    %3 = vector.multi_reduction <add>, %1, %cst [1] : vector<4x128xf32> to vector<4xf32>
    %4 = vector.shape_cast %3 : vector<4xf32> to vector<4x1xf32>
    %cst_2 = arith.constant dense<0.000000e+00> : vector<4xf32>
    %5 = vector.multi_reduction <add>, %2, %cst_2 [1] : vector<4x128xf32> to vector<4xf32>
    %6 = vector.shape_cast %5 : vector<4xf32> to vector<4x1xf32>
    %cst_3 = arith.constant 3.125000e-02 : f32
    %7 = vector.broadcast %cst_3 : f32 to vector<4x1xf32>
    %8 = arith.mulf %4, %7 : vector<4x1xf32>
    %cst_4 = arith.constant 3.125000e-02 : f32
    %9 = vector.broadcast %cst_4 : f32 to vector<4x1xf32>
    %10 = arith.mulf %6, %9 : vector<4x1xf32>
    %11 = arith.mulf %8, %8 : vector<4x1xf32>
    %12 = arith.subf %10, %11 : vector<4x1xf32>
    %cst_5 = arith.constant 0.000000e+00 : f32
    %13 = vector.broadcast %cst_5 : f32 to vector<4x1xf32>
    %14 = arith.maximumf %12, %13 : vector<4x1xf32>
    %c0_6 = arith.constant 0 : index
    %c0_7 = arith.constant 0 : index
    %c0_8 = arith.constant 0 : index
    %15 = vector.load %arg2[%c0_6, %c0_7, %c0_8] : memref<1x4x1xf32, #tpu.memory_space<vmem>>, vector<1x4x1xf32>
    %16 = vector.shape_cast %15 : vector<1x4x1xf32> to vector<4x1xf32>
    %cst_9 = arith.constant 9.99999974E-6 : f32
    %17 = vector.broadcast %cst_9 : f32 to vector<4x1xf32>
    %18 = arith.addf %14, %17 : vector<4x1xf32>
    %19 = math.rsqrt %18 : vector<4x1xf32>
    %20 = arith.mulf %16, %19 : vector<4x1xf32>
    %c0_10 = arith.constant 0 : index
    %c0_11 = arith.constant 0 : index
    %c0_12 = arith.constant 0 : index
    %21 = vector.load %arg3[%c0_10, %c0_11, %c0_12] : memref<1x4x1xf32, #tpu.memory_space<vmem>>, vector<1x4x1xf32>
    %22 = vector.shape_cast %21 : vector<1x4x1xf32> to vector<4x1xf32>
    %23 = arith.mulf %8, %20 : vector<4x1xf32>
    %24 = arith.subf %22, %23 : vector<4x1xf32>
    %25 = vector.broadcast %20 : vector<4x1xf32> to vector<4x128xf32>
    %26 = arith.mulf %1, %25 : vector<4x128xf32>
    %27 = vector.broadcast %24 : vector<4x1xf32> to vector<4x128xf32>
    %28 = arith.addf %26, %27 : vector<4x128xf32>
    %c0_13 = arith.constant 0 : index
    %c0_14 = arith.constant 0 : index
    %c0_15 = arith.constant 0 : index
    %29 = vector.load %arg4[%c0_13, %c0_14, %c0_15] : memref<1x4x128xf32, #tpu.memory_space<vmem>>, vector<1x4x128xf32>
    %30 = vector.shape_cast %29 : vector<1x4x128xf32> to vector<4x128xf32>
    %31 = vector.shape_cast %28 : vector<4x128xf32> to vector<1x4x128xf32>
    tpu.vector_store %arg4[%c0_13, %c0_14, %c0_15], %31 {strides = array<i32>} : memref<1x4x128xf32, #tpu.memory_space<vmem>>, vector<1x4x128xf32>,
    return
  }
  func.func @transform_0(%arg0: i32) -> (i32, i32, i32) {
    %c0_i32 = arith.constant 0 : i32
    %c0_i32_0 = arith.constant 0 : i32
    %c0_i32_1 = arith.constant 0 : i32
    return %arg0, %c0_i32, %c0_i32_0 : i32, i32, i32
  }
  func.func @transform_1(%arg0: i32) -> (i32, i32, i32) {
    %c0_i32 = arith.constant 0 : i32
    %c0_i32_0 = arith.constant 0 : i32
    %c0_i32_1 = arith.constant 0 : i32
    return %arg0, %c0_i32, %c0_i32_0 : i32, i32, i32
  }
  func.func @transform_2(%arg0: i32) -> (i32, i32, i32) {
    %c0_i32 = arith.constant 0 : i32
    %c0_i32_0 = arith.constant 0 : i32
    %c0_i32_1 = arith.constant 0 : i32
    return %arg0, %c0_i32, %c0_i32_0 : i32, i32, i32
  }
  func.func @transform_3(%arg0: i32) -> (i32, i32, i32) {
    %c0_i32 = arith.constant 0 : i32
    %c0_i32_0 = arith.constant 0 : i32
    %c0_i32_1 = arith.constant 0 : i32
    return %arg0, %c0_i32, %c0_i32_0 : i32, i32, i32
  }
}

</mosaic_0001>

<bundles_post_ra>
// kernel: custom-call
= control target key start
LH: loop header
LB: loop body
LE: loop exit
PB: predicated region body
PF: predicated region fallthrough
CT: control target
= control target key end

     0   :  { %2 = vsyncpa [#allocation0], 0  ;;  %s61_s0 = inlined_call_operand.hbm [shape: c64[2,4,16], index: 0, kind: input, shape index: {}]   ;;  %s62_s1 = inlined_call_operand.vmem [shape: f32[2,4,16], index: 1, kind: output, shape index: {}]  }
   0x1   :  { %s3_s8 = sshll.u32 %s62_s1, 4  ;;  %s9_s11 = scalar_lea.hbm %s61_s0, 128  ;;  %s4_s8 = int_to_ptr.vmem [resolvable:$true] %s3_s8 }
   0x2   :  { %p10_p0 = scmp.ne.s32.totalorder %s61_s0, %s9_s11  ;;  %s11_s16 = scalar_lea.hbm %s61_s0, 256 }
   0x3   :  { %p12_p1 = scmp.lt.u32.totalorder %s11_s16, %s9_s11  ;;  %p13_p2 = scmp.lt.u32.totalorder %s9_s11, %s61_s0 }
   0x5   :  { %p14_p3 = por %p13_p2, %p12_p1 }
   0x7   :  { %p15_p4 = pnand %p14_p3, %p10_p0 }
   0x9   :  { %18 = shalt.err (!%p15_p4)  }
   0xa   :  { %s19_s1 = scalar_lea.vmem %s4_s8, 128  ;;  %p24_p6 = scmp.lt.s32.totalorder %s4_s8, %s4_s8 }
   0xb   :  { %p20_p5 = scmp.ne.s32.totalorder %s4_s8, %s19_s1  ;;  %p25_p7 = scmp.lt.s32.totalorder %s19_s1, %s19_s1 }
   0xd   :  { %p26_p8 = por %p25_p7, %p24_p6 }
   0xf   :  { %p27_p9 = pnand %p26_p8, %p20_p5 }
  0x11   :  { %30 = shalt.err (!%p27_p9)  }
  0x12   :  { %6 = dma.hbm_to_vmem [thread:$0]  %s61_s0, 128, %s4_s8, [#allocation0] }
  0x13   :  { %31 = dma.done.wait [#allocation0], 128  }
  0x14   :  { %32 = vsyncadd [#allocation0], 4294967168 }
  0x15   :  { %8 = vsyncpa [#allocation0], 1 }

// kernel: custom-call.1
= control target key start
LH: loop header
LB: loop body
LE: loop exit
PB: predicated region body
PF: predicated region fallthrough
CT: control target
= control target key end

     0   :  { %s59_s0 = inlined_call_operand.hbm [shape: c64[2,4,16], index: 0, kind: input, shape index: {}]   ;;  %s60_s1 = inlined_call_operand.vmem [shape: f32[2,4,16], index: 1, kind: output, shape index: {}]  }
   0x1   :  { %s2_s8 = scalar_lea.hbm %s59_s0, 128 }
   0x2   :  { %3 = vsyncpa [#allocation0], 0  ;;  %s4_s11 = sshll.u32 %s60_s1, 4  ;;  %s34_s14 = scalar_lea.hbm %s59_s0, 256  ;;  %s5_s11 = int_to_ptr.vmem [resolvable:$true] %s4_s11 }
   0x3   :  { %p11_p0 = scmp.ne.s32.totalorder %s2_s8, %s34_s14  ;;  %p13_p1 = scmp.lt.u32.totalorder %s2_s8, %s59_s0 }
   0x4   :  { %p14_p2 = scmp.lt.u32.totalorder %s34_s14, %s34_s14  ;;  %p16_p4 = scmp.lt.u32.totalorder %s34_s14, %s2_s8 }
   0x6   :  { %p15_p3 = por %p14_p2, %p13_p1 }
   0x8   :  { %p17_p5 = por %p16_p4, %p15_p3 }
   0xa   :  { %p18_p6 = pnand %p17_p5, %p11_p0 }
   0xc   :  { %21 = shalt.err (!%p18_p6)  }
   0xd   :  { %s22_s17 = scalar_lea.vmem %s5_s11, 128  ;;  %p27_p8 = scmp.lt.s32.totalorder %s5_s11, %s5_s11 }
   0xe   :  { %p23_p7 = scmp.ne.s32.totalorder %s5_s11, %s22_s17  ;;  %p28_p9 = scmp.lt.s32.totalorder %s22_s17, %s22_s17 }
  0x10   :  { %p29_p10 = por %p28_p9, %p27_p8 }
  0x12   :  { %p30_p11 = pnand %p29_p10, %p23_p7 }
  0x14   :  { %33 = shalt.err (!%p30_p11)  }
  0x15   :  { %7 = dma.hbm_to_vmem [thread:$0]  %s2_s8, 128, %s5_s11, [#allocation0] }
  0x16   :  { %35 = dma.done.wait [#allocation0], 128  }
  0x17   :  { %36 = vsyncadd [#allocation0], 4294967168 }
  0x18   :  { %9 = vsyncpa [#allocation0], 1 }

// kernel: custom-call.2
= control target key start
LH: loop header
LB: loop body
LE: loop exit
PB: predicated region body
PF: predicated region fallthrough
CT: control target
= control target key end

     0   :  { %s37_s0 = inlined_call_operand.vmem [shape: f32[2,4,16], index: 0, kind: input, shape index: {}]   ;;  %s38_s1 = inlined_call_operand.vmem [shape: f32[2,4,16], index: 1, kind: input, shape index: {}]   ;;  %s39_s2 = inlined_call_operand.vmem [shape: c64[2,4,16], index: 2, kind: output, shape index: {}]  }
   0x1   :  { %v5_v0 = vld [vmem:[%s37_s0] sm:$0xff] }
   0x2   :  { %v7_v1 = vld [vmem:[%s38_s1] sm:$0xff]  ;;  %6 = vst [vmem:[%s39_s2] sm:$0xff] %v5_v0 }
   0x3   :  { %9 = vst [vmem:[%s39_s2 + $0x8] sm:$0xff] %v7_v1 }

// kernel: squeeze.2
= control target key start
LH: loop header
LB: loop body
LE: loop exit
PB: predicated region body
PF: predicated region fallthrough
CT: control target
= control target key end

     0   :  { %vm7_vm0 = vcmask 130048   ;;  %s70_s0 = inlined_call_operand.vmem [shape: f32[1,4,32], index: 0, kind: input, shape index: {}]   ;;  %s71_s1 = inlined_call_operand.vmem [shape: f32[4,2,16], index: 1, kind: output, shape index: {}]  }
   0x1   :  { %v4_v0 = vld [vmem:[%s70_s0] sm:$0xf]  ;;  %s44_s0 = smov 112  }
   0x2   :  { %5 = vst [vmem:[#allocation1] sm:$0xf] %v4_v0 }
   0x9   :  { %v9_v1 = vld [vmem:[#allocation1] sm:$0xf]  }
   0xa   :  { %v6_v2 = vld [vmem:[#allocation1] sm:$0xf]   ;;  %10 = vrot.lane.b32.xlu0 %v9_v1, %s44_s0 }
   0xb   :  { %8 = vst.msk [vmem:[#allocation0] ss:$8 sm:$0xf] %vm7_vm0, %v6_v2  }
  0x7c   :  { %v11_v3 = vpop.permute.xlu0 %10  }
  0x7d   :  { %14 = vst.msk [vmem:[#allocation0 + $0x1] ss:$8 sm:$0xf] %vm7_vm0, %v11_v3  }
  0x84   :  { %v18_v4 = vld [vmem:[#allocation0] sm:$0x3]  ;;  %v22_v5 = vld [vmem:[#allocation0 + $0x8] sm:$0x3]  ;;  %v27_v6 = vld [vmem:[#allocation0 + $0x10] sm:$0x3] }
  0x85   :  { %20 = vst [vmem:[%s71_s1] sm:$0x3] %v18_v4  ;;  %40 = vst [vmem:[%s71_s1 + $0x2] sm:$0x3] %v22_v5  ;;  %v33_v7 = vld [vmem:[#allocation0 + $0x18] sm:$0x3] }
  0x86   :  { %41 = vst [vmem:[%s71_s1 + $0x4] sm:$0x3] %v27_v6  ;;  %42 = vst [vmem:[%s71_s1 + $0x6] sm:$0x3] %v33_v7 }

// kernel: naive_complex_batchnorm1d.1
= control target key start
LH: loop header
LB: loop body
LE: loop exit
PB: predicated region body
PF: predicated region fallthrough
CT: control target
= control target key end

     0   :  { %s364_s12 = smov 0   ;;  %s393_s0 = inlined_call_operand.vmem [shape: f32[2,4,128], index: 0, kind: input, shape index: {}]   ;;  %s394_s1 = inlined_call_operand.vmem [shape: f32[2,4,1], index: 1, kind: input, shape index: {}]   ;;  %s395_s2 = inlined_call_operand.vmem [shape: f32[2,4,1], index: 2, kind: input, shape index: {}]   ;;  %s396_s3 = inlined_call_operand.vmem [shape: f32[2,4,128], index: 3, kind: output, shape index: {}]  }
   0x1 LB: > { %s311_s13 = sadd.s32 4294967295, %s341_s12   ;;  %p315_p0 = scmp.ge.s32.totalorder %s341_s12, 1  ;;  %s341_s12 = sphi %s364_s12, %s13_s12  }
   0x2   : > { %p154_p1 = scmp.lt.s32.totalorder %s341_s12, 3 }
   0x4   : > { %p155_p2 = pnand %p315_p0, %p154_p1 }
   0x5   : > { %p184_p3 = scmp.lt.s32.totalorder (!%p155_p2), %s311_s13, 1  ;;  %vm202_vm0 = vcmask (!%p155_p2), 1043456   ;;  %v343_v4 = vmov (!%p155_p2), 0  }
   0x6   : > { %158 = sbr.rel (%p155_p2) target bundleno = 320 (0x140), region = 32  ;;  %331 = vset.pattern.permute.xlu1 (!%p155_p2), %v343_v4  ;;  %332 = vset.pattern.permute.xlu0 (!%p155_p2), %v343_v4 }
   0xd   : > { %s398_s13 = smov (!%p184_p3, %s311_s13), 1 }
   0xe   : > { %s372_s14 = sshll.u32 %s398_s13, 2 }
   0xf   : > { %s187_s17 = scalar_lea.vmem %s393_s0, %s372_s14  ;;  %s191_s20 = scalar_lea.vmem %s394_s1, %s372_s14 }
  0x10   : > { %v200_v0 = vld [vmem:[%s187_s17] sm:$0xf]  ;;  %s195_s23 = scalar_lea.vmem %s395_s2, %s372_s14  ;;  %s199_s26 = scalar_lea.vmem %s396_s3, %s372_s14 }
  0x11   : > { %v203_v1 = vsel %vm202_vm0, %v200_v0, 0.0  ;;  %v201_v2 = vmul.f32 %v200_v0, %v200_v0  ;;  %v214_v13 = vld [vmem:[%s191_s20] sm:$0xf] }
  0x12   : > { %204 = vadd.xlane.f32.xlu0 %v203_v1  ;;  %v218_v16 = vld [vmem:[%s195_s23] sm:$0xf] }
  0x13   : > { %v206_v3 = vsel %vm202_vm0, %v201_v2, 0.0 }
  0x16   : > { %207 = vadd.xlane.f32.xlu0 %v206_v3 }
  0x9f   : > { %v205_v5 = vpop.xlane.xlu0 %204 }
  0xa0   : > { %v209_v6 = vmul.f32 0.03125, %v205_v5 }
  0xa2   : > { %v211_v8 = vmul.f32 %v209_v6, %v209_v6 }
  0xa3   : > { %v208_v7 = vpop.xlane.xlu0 %207 }
  0xa4   : > { %v210_v9 = vmul.f32 0.03125, %v208_v7 }
  0xa6   : > { %v212_v10 = vsub.f32 %v210_v9, %v211_v8 }
  0xa8   : > { %v213_v11 = vmax.f32 %v212_v10, 0.0 }
  0xaa   : > { %v215_v12 = vadd.f32 1e-05, %v213_v11 }
  0xac   : > { %333 = vrsqrt.f32 %v215_v12 }
  0xb6   : > { %v334_v14 = vpop.eup %333 }
  0xb7   : > { %v217_v15 = vmul.f32 %v334_v14, %v214_v13 }
  0xb9   : > { %223 = vperm.xlu1 %331, %v217_v15   ;;  %v219_v17 = vmul.f32 %v217_v15, %v209_v6 }
  0xbb   : > { %v220_v18 = vsub.f32 %v218_v16, %v219_v17 }
  0xbd   : > { %229 = vperm.xlu1 %331, %v220_v18  }
 0x138   : > { %v224_v19 = vpop.permute.xlu1 %223 }
 0x139   : > { %v226_v20 = vmul.f32 %v224_v19, %v200_v0 }
 0x13c   : > { %v230_v21 = vpop.permute.xlu1 %229 }
 0x13d   : > { %v232_v22 = vadd.f32 %v230_v21, %v226_v20 }
 0x13f   : > { %233 = vst [vmem:[%s199_s26] sm:$0xf] %v232_v22 }
 0x140 PF: > { %s13_s12 = sadd.s32 1, %s341_s12  }
 0x141   : > { %p10_p4 = scmp.ge.s32.totalorder %s13_s12, 4  }
 0x143   :  { %12 = sbr.rel (!%p10_p4) target bundleno = 1 (0x1), region = 68 }

</bundles_post_ra>
